<compile_context>
chip_gen: v5e
topology: v5e:2x2
jax: 0.10.0
libtpu: 0.0.40
codegen_flags: <defaults>
</compile_context>

<pallas_src>
import jax
import jax.numpy as jnp
from jax.experimental import pallas as pl
from jax.experimental.pallas import tpu as pltpu

DIM = 128          # model dim (module default 768; scaled down, still lane-aligned)
BITS = 32          # number of "bit" logits
HEXPERTS = 4       # top-k experts
TOKEN_TILE = 4096  # max tokens per grid step (sweepable; 4096-8192 good on v7x)


def _round_up(a, b):
    return ((a + b - 1) // b) * b


def rambutan_mlp_kernel(x_ref, wa_ref, ba_ref, emb_ref, aw_ref, ab_ref, o_ref):
    wa = wa_ref[...]                                   # (D, BITS), mxu dtype (bf16 default)
    mxu_dtype = wa.dtype

    # A1_c_w: logits = x @ Wa + ba  -> (TN, BITS); MXU with f32 accumulation.
    logits = jnp.dot(x_ref[...].astype(mxu_dtype), wa,
                     preferred_element_type=jnp.float32) + ba_ref[...]

    # Unnormalized softmax numerator; the 1/sum normalization is folded into the
    # output as one per-token (TN,1) divide after the aggregation matmul.
    m = jnp.max(logits, axis=-1, keepdims=True)
    e = jnp.exp(logits - m)                            # (TN, BITS), >= 0
    inv_sum = 1.0 / jnp.sum(e, axis=-1, keepdims=True) # (TN, 1)

    # Top-4 via iterative masked argmax, accumulated as a sparse weight row over
    # the BITS axis: w_bits[t, i_j] = aggr_w[j] * e[t, i_j].
    # One XLU max-reduce per expert; exact float ties across lanes (prob ~0 for
    # continuous inputs) would select all tied lanes at one rank.
    w_bits = jnp.zeros_like(e)
    cur = e
    for j in range(HEXPERTS):                          # unrolled (4 iterations)
        mx = jnp.max(cur, axis=-1, keepdims=True)      # (TN, 1)
        sel = cur == mx                                # argmax lane(s)
        w_bits = w_bits + jnp.where(sel, aw_ref[j] * cur, jnp.float32(0.0))
        cur = jnp.where(sel, jnp.float32(-1.0), cur)   # e >= 0, so -1 masks safely

    # Fused Embedding gather + expert_aggr Linear(4,1) as a dense MXU matmul:
    #   out[t, d] = inv_sum[t] * sum_b w_bits[t, b] * E[b, d] + aggr_b
    agg = (jnp.dot(w_bits.astype(mxu_dtype), emb_ref[...],
                   preferred_element_type=jnp.float32) * inv_sum + ab_ref[0])

    # Re-read the VMEM-resident x tile here (instead of holding an f32 copy from
    # the top of the kernel) to keep its live range short at large token tiles.
    o_ref[...] = (x_ref[...].astype(jnp.float32) * agg).astype(o_ref.dtype)
    # TODO(synk): dropout has p=0.0 -> identity; omitted (no RNG needed).


def rambutan_mlp(x, wa, ba, emb, aw, ab, *, token_tile=TOKEN_TILE,
                 mxu_dtype=jnp.bfloat16, min_grid=2, buffer_count=None,
                 interpret=False):
    """x: (..., D) in f32 or bf16; wa: (D, BITS); ba: (1, BITS) or (BITS,);
    emb: (BITS, D); aw: (HEXPERTS,); ab: (1,). Output dtype == x dtype."""
    orig_shape = x.shape
    d = orig_shape[-1]
    x2 = x.reshape(-1, d)
    n = x2.shape[0]
    bits = wa.shape[1]

    # Adaptive token tile:
    #  - at least `min_grid` grid steps so the 'parallel' axis can shard across
    #    both v7x TensorCores even at moderate n;
    #  - tile ~= cdiv(n, steps) rounded to the sublane (8): padding waste < 8
    #    rows/step instead of up to token_tile-1;
    #  - capped at token_tile (the VMEM / sweep knob).
    steps = max(min_grid, pl.cdiv(n, token_tile))
    tile = min(token_tile, max(8, _round_up(pl.cdiv(n, steps), 8)))
    n_pad = _round_up(n, tile)
    if n_pad != n:
        x2 = jnp.pad(x2, ((0, n_pad - n), (0, 0)))
    grid = (n_pad // tile,)

    # Pre-cast the two MXU weight operands once (bf16 keeps the K/N=32 matmuls
    # 3-6x cheaper so they stay hidden under the HBM-bound DMA, esp. on v5e).
    wa_m = wa.astype(mxu_dtype)
    emb_m = emb.astype(mxu_dtype)
    ba_f = ba.astype(jnp.float32).reshape(1, bits)
    aw_f = aw.astype(jnp.float32).reshape(HEXPERTS)
    ab_f = ab.astype(jnp.float32).reshape(1)

    itemsize = jnp.dtype(x.dtype).itemsize
    nbuf = buffer_count if buffer_count is not None else 2
    vmem_limit = int(nbuf * tile * d * (2 * itemsize)                 # x + out buffers
                     + 2 * d * bits * jnp.dtype(mxu_dtype).itemsize   # Wa + emb
                     + (16 << 20))                                    # temporaries slack

    def _io_spec(shape, index_map):
        if buffer_count is None:
            return pl.BlockSpec(shape, index_map)
        return pl.BlockSpec(shape, index_map, pipeline_mode=pl.Buffered(buffer_count))

    out = pl.pallas_call(
        rambutan_mlp_kernel,
        out_shape=jax.ShapeDtypeStruct((n_pad, d), x.dtype),
        grid_spec=pltpu.PrefetchScalarGridSpec(
            num_scalar_prefetch=0,
            grid=grid,
            in_specs=[
                _io_spec((tile, d), lambda i: (i, 0)),              # x tile (pipelined)
                pl.BlockSpec((d, bits), lambda i: (0, 0)),          # Wa (VMEM-resident)
                pl.BlockSpec((1, bits), lambda i: (0, 0)),          # ba
                pl.BlockSpec((bits, d), lambda i: (0, 0)),          # Hexpertemb table
                pl.BlockSpec(memory_space=pltpu.MemorySpace.SMEM),  # expert_aggr weight (4,)
                pl.BlockSpec(memory_space=pltpu.MemorySpace.SMEM),  # expert_aggr bias (1,)
            ],
            out_specs=_io_spec((tile, d), lambda i: (i, 0)),
        ),
        # Token-tile axis carries no accumulator -> shard across TensorCores
        # (2x on v7x; harmless no-op on single-TC v5e/v6e).
        compiler_params=pltpu.CompilerParams(
            dimension_semantics=("parallel",),
            vmem_limit_bytes=vmem_limit,
        ),
        interpret=interpret,
    )(x2, wa_m, ba_f, emb_m, aw_f, ab_f)

    if n_pad != n:
        out = out[:n]
    return out.reshape(orig_shape)


def ref_forward(x, wa, ba, emb, aw, ab, mxu_dtype=jnp.bfloat16):
    """Module-faithful pure-JAX reference (softmax -> top-4 -> embedding gather
    -> Linear(4,1) aggregation -> x*out). The two matmul-equivalent steps use
    operands rounded to `mxu_dtype`, matching the kernel's MXU precision, so
    top-4 selection agrees with the kernel (near-tie flips aside)."""
    xf = x.astype(jnp.float32)
    logits = jnp.dot(xf.astype(mxu_dtype), wa.astype(mxu_dtype),
                     preferred_element_type=jnp.float32) + ba.reshape(-1)
    h = jax.nn.softmax(logits, axis=-1)
    v, i = jax.lax.top_k(h, HEXPERTS)                              # (..., 4)
    emb_q = emb.astype(mxu_dtype).astype(jnp.float32)
    h_emb = v[..., None] * emb_q[i]                                # (..., 4, D)
    out = jnp.einsum("...jd,j->...d", h_emb, aw.reshape(-1)) + ab.reshape(-1)[0]
    return xf * out


if __name__ == "__main__":
    key = jax.random.PRNGKey(0)
    kx, kw, kb, ke, ka, kab = jax.random.split(key, 6)

    B, S = 2, 8
    x = jax.random.normal(kx, (B, S, DIM), jnp.float32)

    # Deterministic synthetic parameters (shapes from RambutanMLP.__init__).
    wa = jax.random.normal(kw, (DIM, BITS), jnp.float32) * (1.0 / DIM ** 0.5)  # A1_c_w.weight^T
    ba = jax.random.normal(kb, (1, BITS), jnp.float32) * 0.02                  # A1_c_w.bias
    emb = jax.random.normal(ke, (BITS, DIM), jnp.float32)                      # Hexpertemb.weight
    aw = jax.random.normal(ka, (HEXPERTS,), jnp.float32)                       # expert_aggr.weight
    ab = jax.random.normal(kab, (1,), jnp.float32) * 0.02                      # expert_aggr.bias

    # Main check (f32 I/O). Tolerance covers the kernel's bf16 MXU-operand
    # rounding in the aggregation matmul vs. the reference's f32 gather.
    out = jax.block_until_ready(rambutan_mlp(x, wa, ba, emb, aw, ab))
    ref = ref_forward(x, wa, ba, emb, aw, ab)
    assert out.shape == x.shape
    err = float(jnp.max(jnp.abs(out - ref)))
    assert jnp.allclose(out, ref, atol=5e-2, rtol=5e-2), err

    # Exercise the padding path (token count not a multiple of the tile).
    x_odd = jax.random.normal(kx, (3, 7, DIM), jnp.float32)
    out_odd = jax.block_until_ready(rambutan_mlp(x_odd, wa, ba, emb, aw, ab))
    ref_odd = ref_forward(x_odd, wa, ba, emb, aw, ab)
    assert out_odd.shape == x_odd.shape
    assert jnp.allclose(out_odd, ref_odd, atol=5e-2, rtol=5e-2)

    # Exercise bf16 I/O (memory-bound kernel -> ~2x from halved HBM traffic).
    out_bf16 = jax.block_until_ready(
        rambutan_mlp(x.astype(jnp.bfloat16), wa, ba, emb, aw, ab))
    assert out_bf16.dtype == jnp.bfloat16 and out_bf16.shape == x.shape
    assert bool(jnp.all(jnp.isfinite(out_bf16.astype(jnp.float32))))

    print("KERNEL_OK")
</pallas_src>

<mosaic_0001>
module attributes {stable_mosaic.version = 11 : i64} {
  func.func @rambutan_mlp_kernel(%arg0: i32, %arg1: memref<8x128xf32, #tpu.memory_space<vmem>>, %arg2: memref<128x32xbf16, #tpu.memory_space<vmem>>, %arg3: memref<1x32xf32, #tpu.memory_space<vmem>>, %arg4: memref<32x128xbf16, #tpu.memory_space<vmem>>, %arg5: memref<4xf32, #tpu.memory_space<smem>>, %arg6: memref<1xf32, #tpu.memory_space<smem>>, %arg7: memref<8x128xf32, #tpu.memory_space<vmem>>) attributes {dimension_semantics = [#tpu.dimension_semantics<parallel>], iteration_bounds = array<i64: 2>, scalar_prefetch = 0 : i64, scratch_operands = 0 : i64, tpu.core_type = #tpu.core_type<tc>, window_params = [{transform_indices = @transform_0, window_bounds = array<i64: 8, 128>}, {pipeline_mode = #tpu.pipeline_mode<synchronous>, transform_indices = @transform_1, window_bounds = array<i64: 128, 32>}, {pipeline_mode = #tpu.pipeline_mode<synchronous>, transform_indices = @transform_2, window_bounds = array<i64: 1, 32>}, {pipeline_mode = #tpu.pipeline_mode<synchronous>, transform_indices = @transform_3, window_bounds = array<i64: 32, 128>}, {transform_indices = @transform_4, window_bounds = array<i64: 4>}, {transform_indices = @transform_5, window_bounds = array<i64: 1>}, {transform_indices = @transform_6, window_bounds = array<i64: 8, 128>}]} {
    %c0 = arith.constant 0 : index
    %c0_0 = arith.constant 0 : index
    %0 = vector.load %arg2[%c0, %c0_0] : memref<128x32xbf16, #tpu.memory_space<vmem>>, vector<128x32xbf16>
    %c0_1 = arith.constant 0 : index
    %c0_2 = arith.constant 0 : index
    %1 = vector.load %arg1[%c0_1, %c0_2] : memref<8x128xf32, #tpu.memory_space<vmem>>, vector<8x128xf32>
    %2 = arith.truncf %1 : vector<8x128xf32> to vector<8x128xbf16>
    %cst = arith.constant dense<0.000000e+00> : vector<8x32xf32>
    %3 = tpu.matmul %2, %0, %cst {dimension_numbers = #tpu.dot_dimension_numbers<[1], [0], [0], [1], [0, 0, 1, 1], [], []>} : vector<8x128xbf16>, vector<128x32xbf16>, vector<8x32xf32> -> vector<8x32xf32>
    %c0_3 = arith.constant 0 : index
    %c0_4 = arith.constant 0 : index
    %4 = vector.load %arg3[%c0_3, %c0_4] : memref<1x32xf32, #tpu.memory_space<vmem>>, vector<1x32xf32>
    %5 = vector.broadcast %4 : vector<1x32xf32> to vector<8x32xf32>
    %6 = arith.addf %3, %5 : vector<8x32xf32>
    %cst_5 = arith.constant dense<0xFF800000> : vector<8xf32>
    %7 = vector.multi_reduction <maximumf>, %6, %cst_5 [1] : vector<8x32xf32> to vector<8xf32>
    %8 = vector.shape_cast %7 : vector<8xf32> to vector<8x1xf32>
    %9 = vector.broadcast %8 : vector<8x1xf32> to vector<8x32xf32>
    %10 = arith.subf %6, %9 : vector<8x32xf32>
    %11 = math.exp %10 : vector<8x32xf32>
    %cst_6 = arith.constant dense<0.000000e+00> : vector<8xf32>
    %12 = vector.multi_reduction <add>, %11, %cst_6 [1] : vector<8x32xf32> to vector<8xf32>
    %13 = vector.shape_cast %12 : vector<8xf32> to vector<8x1xf32>
    %cst_7 = arith.constant 1.000000e+00 : f32
    %14 = vector.broadcast %cst_7 : f32 to vector<8x1xf32>
    %15 = arith.divf %14, %13 : vector<8x1xf32>
    %cst_8 = arith.constant 0.000000e+00 : f32
    %16 = vector.broadcast %cst_8 : f32 to vector<8x32xf32>
    %cst_9 = arith.constant dense<0xFF800000> : vector<8xf32>
    %17 = vector.multi_reduction <maximumf>, %11, %cst_9 [1] : vector<8x32xf32> to vector<8xf32>
    %18 = vector.shape_cast %17 : vector<8xf32> to vector<8x1xf32>
    %19 = vector.broadcast %18 : vector<8x1xf32> to vector<8x32xf32>
    %20 = arith.cmpf oeq, %11, %19 : vector<8x32xf32>
    %c0_10 = arith.constant 0 : index
    %21 = memref.load %arg5[%c0_10] : memref<4xf32, #tpu.memory_space<smem>>
    %22 = vector.broadcast %21 : f32 to vector<8x32xf32>
    %23 = arith.mulf %22, %11 : vector<8x32xf32>
    %cst_11 = arith.constant 0.000000e+00 : f32
    %24 = vector.broadcast %cst_11 : f32 to vector<8x32xf32>
    %25 = arith.select %20, %23, %24 : vector<8x32xi1>, vector<8x32xf32>
    %26 = arith.addf %16, %25 : vector<8x32xf32>
    %cst_12 = arith.constant -1.000000e+00 : f32
    %27 = vector.broadcast %cst_12 : f32 to vector<8x32xf32>
    %28 = arith.select %20, %27, %11 : vector<8x32xi1>, vector<8x32xf32>
    %cst_13 = arith.constant dense<0xFF800000> : vector<8xf32>
    %29 = vector.multi_reduction <maximumf>, %28, %cst_13 [1] : vector<8x32xf32> to vector<8xf32>
    %30 = vector.shape_cast %29 : vector<8xf32> to vector<8x1xf32>
    %31 = vector.broadcast %30 : vector<8x1xf32> to vector<8x32xf32>
    %32 = arith.cmpf oeq, %28, %31 : vector<8x32xf32>
    %c1 = arith.constant 1 : index
    %33 = memref.load %arg5[%c1] : memref<4xf32, #tpu.memory_space<smem>>
    %34 = vector.broadcast %33 : f32 to vector<8x32xf32>
    %35 = arith.mulf %34, %28 : vector<8x32xf32>
    %cst_14 = arith.constant 0.000000e+00 : f32
    %36 = vector.broadcast %cst_14 : f32 to vector<8x32xf32>
    %37 = arith.select %32, %35, %36 : vector<8x32xi1>, vector<8x32xf32>
    %38 = arith.addf %26, %37 : vector<8x32xf32>
    %cst_15 = arith.constant -1.000000e+00 : f32
    %39 = vector.broadcast %cst_15 : f32 to vector<8x32xf32>
    %40 = arith.select %32, %39, %28 : vector<8x32xi1>, vector<8x32xf32>
    %cst_16 = arith.constant dense<0xFF800000> : vector<8xf32>
    %41 = vector.multi_reduction <maximumf>, %40, %cst_16 [1] : vector<8x32xf32> to vector<8xf32>
    %42 = vector.shape_cast %41 : vector<8xf32> to vector<8x1xf32>
    %43 = vector.broadcast %42 : vector<8x1xf32> to vector<8x32xf32>
    %44 = arith.cmpf oeq, %40, %43 : vector<8x32xf32>
    %c2 = arith.constant 2 : index
    %45 = memref.load %arg5[%c2] : memref<4xf32, #tpu.memory_space<smem>>
    %46 = vector.broadcast %45 : f32 to vector<8x32xf32>
    %47 = arith.mulf %46, %40 : vector<8x32xf32>
    %cst_17 = arith.constant 0.000000e+00 : f32
    %48 = vector.broadcast %cst_17 : f32 to vector<8x32xf32>
    %49 = arith.select %44, %47, %48 : vector<8x32xi1>, vector<8x32xf32>
    %50 = arith.addf %38, %49 : vector<8x32xf32>
    %cst_18 = arith.constant -1.000000e+00 : f32
    %51 = vector.broadcast %cst_18 : f32 to vector<8x32xf32>
    %52 = arith.select %44, %51, %40 : vector<8x32xi1>, vector<8x32xf32>
    %cst_19 = arith.constant dense<0xFF800000> : vector<8xf32>
    %53 = vector.multi_reduction <maximumf>, %52, %cst_19 [1] : vector<8x32xf32> to vector<8xf32>
    %54 = vector.shape_cast %53 : vector<8xf32> to vector<8x1xf32>
    %55 = vector.broadcast %54 : vector<8x1xf32> to vector<8x32xf32>
    %56 = arith.cmpf oeq, %52, %55 : vector<8x32xf32>
    %c3 = arith.constant 3 : index
    %57 = memref.load %arg5[%c3] : memref<4xf32, #tpu.memory_space<smem>>
    %58 = vector.broadcast %57 : f32 to vector<8x32xf32>
    %59 = arith.mulf %58, %52 : vector<8x32xf32>
    %cst_20 = arith.constant 0.000000e+00 : f32
    %60 = vector.broadcast %cst_20 : f32 to vector<8x32xf32>
    %61 = arith.select %56, %59, %60 : vector<8x32xi1>, vector<8x32xf32>
    %62 = arith.addf %50, %61 : vector<8x32xf32>
    %63 = arith.truncf %62 : vector<8x32xf32> to vector<8x32xbf16>
    %c0_21 = arith.constant 0 : index
    %c0_22 = arith.constant 0 : index
    %64 = vector.load %arg4[%c0_21, %c0_22] : memref<32x128xbf16, #tpu.memory_space<vmem>>, vector<32x128xbf16>
    %cst_23 = arith.constant dense<0.000000e+00> : vector<8x128xf32>
    %65 = tpu.matmul %63, %64, %cst_23 {dimension_numbers = #tpu.dot_dimension_numbers<[1], [0], [0], [1], [0, 0, 1, 1], [], []>} : vector<8x32xbf16>, vector<32x128xbf16>, vector<8x128xf32> -> vector<8x128xf32>
    %66 = vector.broadcast %15 : vector<8x1xf32> to vector<8x128xf32>
    %67 = arith.mulf %65, %66 : vector<8x128xf32>
    %c0_24 = arith.constant 0 : index
    %68 = memref.load %arg6[%c0_24] : memref<1xf32, #tpu.memory_space<smem>>
    %69 = vector.broadcast %68 : f32 to vector<8x128xf32>
    %70 = arith.addf %67, %69 : vector<8x128xf32>
    %c0_25 = arith.constant 0 : index
    %c0_26 = arith.constant 0 : index
    %71 = vector.load %arg1[%c0_25, %c0_26] : memref<8x128xf32, #tpu.memory_space<vmem>>, vector<8x128xf32>
    %72 = arith.mulf %71, %70 : vector<8x128xf32>
    %c0_27 = arith.constant 0 : index
    %c0_28 = arith.constant 0 : index
    %73 = vector.load %arg7[%c0_27, %c0_28] : memref<8x128xf32, #tpu.memory_space<vmem>>, vector<8x128xf32>
    tpu.vector_store %arg7[%c0_27, %c0_28], %72 {strides = array<i32>} : memref<8x128xf32, #tpu.memory_space<vmem>>, vector<8x128xf32>,
    return
  }
  func.func @transform_0(%arg0: i32) -> (i32, i32) {
    %c0_i32 = arith.constant 0 : i32
    %c0_i32_0 = arith.constant 0 : i32
    return %arg0, %c0_i32 : i32, i32
  }
  func.func @transform_1(%arg0: i32) -> (i32, i32) {
    %c0_i32 = arith.constant 0 : i32
    %c0_i32_0 = arith.constant 0 : i32
    %c0_i32_1 = arith.constant 0 : i32
    return %c0_i32, %c0_i32_0 : i32, i32
  }
  func.func @transform_2(%arg0: i32) -> (i32, i32) {
    %c0_i32 = arith.constant 0 : i32
    %c0_i32_0 = arith.constant 0 : i32
    %c0_i32_1 = arith.constant 0 : i32
    return %c0_i32, %c0_i32_0 : i32, i32
  }
  func.func @transform_3(%arg0: i32) -> (i32, i32) {
    %c0_i32 = arith.constant 0 : i32
    %c0_i32_0 = arith.constant 0 : i32
    %c0_i32_1 = arith.constant 0 : i32
    return %c0_i32, %c0_i32_0 : i32, i32
  }
  func.func @transform_4(%arg0: i32) -> i32 {
    %c0_i32 = arith.constant 0 : i32
    %c0_i32_0 = arith.constant 0 : i32
    return %c0_i32 : i32
  }
  func.func @transform_5(%arg0: i32) -> i32 {
    %c0_i32 = arith.constant 0 : i32
    %c0_i32_0 = arith.constant 0 : i32
    return %c0_i32 : i32
  }
  func.func @transform_6(%arg0: i32) -> (i32, i32) {
    %c0_i32 = arith.constant 0 : i32
    %c0_i32_0 = arith.constant 0 : i32
    return %arg0, %c0_i32 : i32, i32
  }
}

</mosaic_0001>

<bundles_post_ra>
// kernel: tpu_custom_call.1
= control target key start
LH: loop header
LB: loop body
LE: loop exit
PB: predicated region body
PF: predicated region fallthrough
CT: control target
= control target key end

     0   :  { %s913_s0 = inlined_call_operand.vmem [shape: f32[16,128], index: 0, kind: input, shape index: {}]   ;;  %s914_s1 = inlined_call_operand.vmem [shape: bf16[128,32], index: 1, kind: input, shape index: {}]   ;;  %s915_s2 = inlined_call_operand.vmem [shape: f32[1,32], index: 2, kind: input, shape index: {}]   ;;  %s916_s3 = inlined_call_operand.vmem [shape: bf16[32,128], index: 3, kind: input, shape index: {}]   ;;  %s917_s4 = inlined_call_operand.vmem [shape: f32[4], index: 4, kind: input, shape index: {}]   ;;  %s918_s5 = inlined_call_operand.<no memory space> [shape: f32[1], index: 5, kind: input, shape index: {}]   ;;  %s919_s6 = inlined_call_operand.hbm [shape: f32[16,128], index: 6, kind: output, shape index: {}]  }
   0x1   :  { %11 = sst [smem:[#allocation2]] %s918_s5 }
   0x2   :  { %12 = vsyncpa [#allocation5], 0 }
   0x3   :  { %13 = vsyncpa [#allocation4], 0 }
   0x4   :  { %15 = vsyncpa [#allocation4 + $0x1], 0  ;;  %s779_s23 = smov 0   ;;  %s781_s24 = smov 0  }
   0x5   :  { %s783_s25 = smov 0   ;;  %s785_s26 = smov 0  }
   0x6 LB: > { %s800_s5 = sadd.s32 4294967295, %s738_s26   ;;  %s536_s27 = sadd.s32 4294967294, %s738_s26   ;;  %s738_s26 = sphi %s785_s26, %s925_s26   ;;  %s734_s25 = sphi %s783_s25, %s924_s25   ;;  %s730_s24 = sphi %s781_s24, %s923_s24   ;;  %s726_s23 = sphi %s779_s23, %s922_s23  }
   0x7   : > { %s804_s28 = sadd.s32 1, %s738_s26   ;;  %s159_s29 = sadd.s32 1, %s734_s25 }
   0x8   : > { %s156_s30 = ssub.s32 %s738_s26, %s804_s28  ;;  %p169_p0 = scmp.ne.s32.totalorder %s734_s25, %s730_s24 }
   0x9   : > { %p157_p1 = scmp.eq.s32.totalorder %s156_s30, 0  ;;  %p170_p2 = scmp.eq.s32.totalorder %s800_s5, 1 }
   0xa   : > { %p175_p3 = scmp.ne.s32.totalorder %s730_s24, %s726_s23  ;;  %p176_p4 = scmp.eq.s32.totalorder %s536_s27, 1 }
   0xb   : > { %s815_s7 = scalar_select %p157_p1, %s734_s25, %s159_s29  }
   0xc   : > { %p817_p5 = por %p170_p2, %p169_p0  ;;  %p821_p6 = por %p176_p4, %p175_p3 }
   0xd   : > { %p537_p7 = scmp.ge.s32.totalorder %s738_s26, 1  ;;  %p183_p8 = scmp.lt.s32.totalorder %s738_s26, 3 }
   0xe   : > { %p616_p9 = scmp.eq.s32.totalorder %s800_s5, 0  ;;  %s204_s12 = sshll.u32 %s917_s4, 4  ;;  %s205_s12 = int_to_ptr.vmem [resolvable:$true] %s204_s12 }
   0xf   : > { %p184_p10 = pnand %p537_p7, %p183_p8  ;;  %s740_s13 = smov [#allocation3]  }
  0x11   : > { %p608_p11 = pneg %p184_p10  ;;  %227 = sbr.rel (%p184_p10) target bundleno = 929 (0x3a1), region = 44 }
  0x13   : > { %p609_p12 = pnand %p616_p9, %p608_p11 }
  0x15   : > { %611 = dma.vmem_to_smem (!%p609_p12), %s205_s12, 16, %s740_s13, [#allocation5]  }
  0x16   : > { %717 = dma.done.wait (%p616_p9), [#allocation5], 16  }
  0x17   : > { %719 = vsyncadd (%p616_p9), [#allocation5], 4294967280 }
  0x18   : > { %234 = sfence }
  0x19   : > { %v599_v0 = vld [vmem:[%s914_s1 + $0x38] sm:$0xff]  ;;  %v598_v1 = vld [vmem:[%s914_s1 + $0x30] sm:$0xff]  ;;  %v597_v2 = vld [vmem:[%s914_s1 + $0x28] sm:$0xff]  ;;  %p258_p13 = scmp.lt.s32.totalorder %s800_s5, 1  ;;  %vm346_vm0 = vcmask 261120   ;;  %s375_s21 = sld [smem:[#allocation3]] }
  0x1a   : > { %333 = vmatpush.bf16.msra.mxu0 %v599_v0  ;;  %v596_v3 = vld [vmem:[%s914_s1 + $0x20] sm:$0xff]  ;;  %v595_v4 = vld [vmem:[%s914_s1 + $0x18] sm:$0xff]  ;;  %v594_v5 = vld [vmem:[%s914_s1 + $0x10] sm:$0xff]  ;;  %s576_s22 = sld [smem:[#allocation3 + $0x1]]  ;;  %s255_s14 = sand.u32 1, %s730_s24  }
  0x1b   : > { %s259_s29 = scalar_select %p258_p13, %s800_s5, 1  ;;  %v593_v6 = vld [vmem:[%s914_s1 + $0x8] sm:$0xff]  ;;  %v592_v7 = vld [vmem:[%s914_s1] sm:$0xff] }
  0x1c   : > { %v652_v10 = vld [vmem:[%s915_s2] ss:$0 sm:$0xff]  ;;  %v601_v33 = vld [vmem:[%s916_s3 + $0x8] sm:$0xff]  ;;  %s577_s30 = sld [smem:[#allocation3 + $0x2]]  ;;  %s542_s15 = sshll.u32 %s255_s14, 3 }
  0x1d   : > { %s543_s11 = sshll.u32 %s259_s29, 3  ;;  %436 = vmatpush.bf16.msra.mxu1 %v601_v33  ;;  %v600_v42 = vld [vmem:[%s916_s3] sm:$0xff]  ;;  %s578_s12 = sld [smem:[#allocation3 + $0x3]] }
  0x1e   : > { %334 = vmatpush.bf16.msra.mxu0 %v598_v1  ;;  %s261_s16 = scalar_lea.vmem %s913_s0, %s543_s11  ;;  %s444_s13 = sld [smem:[#allocation2]] }
  0x1f   : > { %v860_v8 = vld [vmem:[%s261_s16] sm:$0xff]  ;;  %v376_v23 = vstv %s375_s21  ;;  %s589_s16 = sshll.u32 %s800_s5, 3  ;;  %s257_s20 = scalar_lea.vmem [#allocation6], %s542_s15 }
  0x20   : > { %v280_v9 = vpack.c.bf16 %v860_v8, %v860_v8  ;;  %v386_v24 = vstv %s576_s22  ;;  %s460_s19 = scalar_lea.hbm %s919_s6, %s589_s16  ;;  %s462_s21 = sshll.u32 %s257_s20, 4  ;;  %s463_s21 = int_to_ptr.vmem [resolvable:$true] %s462_s21 }
  0x21   : > { %437 = vmatpush.bf16.msra.mxu1 %v600_v42  ;;  %s464_s22 = sshll.u32 %s460_s19, 4  ;;  %s450_s5 = scalar_lea.sflag [#allocation4], %s255_s14  ;;  %s465_s22 = int_to_ptr.hbm [resolvable:$true] %s464_s22 }
  0x22   : > { %335 = vmatpush.bf16.msra.mxu0 %v597_v2  ;;  %v396_v34 = vstv %s577_s30  ;;  %s686_s27 = sshra.s32 %s465_s22, 4  ;;  %s692_s11 = scalar_lea.hbm %s919_s6, 16  ;;  %s687_s27 = int_to_ptr.hbm [resolvable:$true] %s686_s27 }
  0x23   : > { %v406_v43 = vstv %s578_s12  ;;  %s688_s29 = scalar_lea.hbm %s687_s27, 8  ;;  %p693_p3 = scmp.lt.s32.totalorder %s687_s27, %s919_s6 }
  0x24   : > { %v445_v61 = vstv %s444_s13  ;;  %p689_p0 = scmp.ne.s32.totalorder %s687_s27, %s688_s29  ;;  %p694_p4 = scmp.lt.s32.totalorder %s692_s11, %s688_s29 }
  0x26   : > { %336 = vmatpush.bf16.msra.mxu0 %v596_v3  ;;  %p690_p1 = pnand %p689_p0, %p817_p5  ;;  %p695_p7 = por %p694_p4, %p693_p3 }
  0x28   : > { %p691_p2 = pneg %p690_p1 }
  0x2a   : > { %337 = vmatpush.bf16.msra.mxu0 %v595_v4  ;;  %p696_p8 = pnand %p695_p7, %p691_p2 }
  0x2e   : > { %338 = vmatpush.bf16.msra.mxu0 %v594_v5 }
  0x32   : > { %339 = vmatpush.bf16.msra.mxu0 %v593_v6 }
  0x36   : > { %340 = vmatpush.bf16.msra.mxu0 %v592_v7 }
  0x39   : > { %341 = vmatmul.bf16.vlgmr.msra.gmra.mxu0 %v280_v9 }
  0xb6   : > { %v342_v11 = vpop.f32.mrf.mxu0 }
  0xb7   : > { %v343_v12 = vadd.f32 %v652_v10, %v342_v11 }
  0xb9   : > { %v347_v13 = vsel %vm346_vm0, %v343_v12, -inf }
  0xba   : > { %348 = vmax.xlane.f32.xlu0 %v347_v13 }
  0xbe   : > { %v344_v14 = vpop.f32.mrf.mxu0 }
 0x12d   : > { %v349_v15 = vpop.xlane.xlu0 %348 }
 0x12e   : > { %v350_v16 = vsub.f32 %v343_v12, %v349_v15 }
 0x130   : > { %v351_v17 = vmul.f32 1.442695, %v350_v16 }
 0x132   : > { %653 = vpow2.f32 %v351_v17 }
 0x138   : > { %v654_v18 = vpop.eup %653 }
 0x139   : > { %v371_v19 = vsel %vm346_vm0, %v654_v18, -inf  ;;  %v377_v25 = vmul.f32 %v654_v18, %v376_v23  ;;  %v353_v41 = vsel %vm346_vm0, %v654_v18, 0.0 }
 0x13a   : > { %372 = vmax.xlane.f32.xlu0 %v371_v19 }
 0x1ad   : > { %v373_v20 = vpop.xlane.xlu0 %372 }
 0x1ae   : > { %vm374_vm1 = vcmp.eq.f32.partialorder %v654_v18, %v373_v20 }
 0x1af   : > { %v380_v21 = vsel %vm374_vm1, -1.0, %v654_v18  ;;  %v378_v28 = vsel %vm374_vm1, %v377_v25, 0.0 }
 0x1b0   : > { %v381_v22 = vsel %vm346_vm0, %v380_v21, -inf  ;;  %v387_v26 = vmul.f32 %v386_v24, %v380_v21 }
 0x1b1   : > { %382 = vmax.xlane.f32.xlu1 %v381_v22 }
 0x224   : > { %v383_v27 = vpop.xlane.xlu1 %382 }
 0x225   : > { %vm384_vm2 = vcmp.eq.f32.partialorder %v380_v21, %v383_v27 }
 0x226   : > { %v388_v29 = vsel %vm384_vm2, %v387_v26, 0.0  ;;  %v390_v30 = vsel %vm384_vm2, -1.0, %v380_v21 }
 0x227   : > { %v389_v31 = vadd.f32 %v388_v29, %v378_v28  ;;  %v391_v32 = vsel %vm346_vm0, %v390_v30, -inf  ;;  %v397_v35 = vmul.f32 %v396_v34, %v390_v30 }
 0x228   : > { %392 = vmax.xlane.f32.xlu1 %v391_v32 }
 0x29b   : > { %v393_v36 = vpop.xlane.xlu1 %392 }
 0x29c   : > { %vm394_vm3 = vcmp.eq.f32.partialorder %v390_v30, %v393_v36 }
 0x29d   : > { %v398_v37 = vsel %vm394_vm3, %v397_v35, 0.0  ;;  %v400_v38 = vsel %vm394_vm3, -1.0, %v390_v30 }
 0x29e   : > { %v399_v39 = vadd.f32 %v398_v37, %v389_v31  ;;  %v401_v40 = vsel %vm346_vm0, %v400_v38, -inf  ;;  %v407_v44 = vmul.f32 %v406_v43, %v400_v38 }
 0x29f   : > { %402 = vmax.xlane.f32.xlu2 %v401_v40 }
 0x2a7   : > { %354 = vadd.xlane.f32.xlu2 %v353_v41 }
 0x312   : > { %v403_v45 = vpop.xlane.xlu2 %402 }
 0x313   : > { %vm404_vm4 = vcmp.eq.f32.partialorder %v400_v38, %v403_v45 }
 0x314   : > { %v408_v46 = vsel %vm404_vm4, %v407_v44, 0.0 }
 0x315   : > { %v409_v47 = vadd.f32 %v408_v46, %v399_v39 }
 0x317   : > { %v410_v48 = vpack.c.bf16 %v409_v47, %v409_v47 }
 0x319   : > { %587 = vmatmul.msk.bf16.vlgmr.msra.gmra.mxu1 %vm346_vm0, %v410_v48 }
 0x31a   : > { %v355_v49 = vpop.xlane.xlu2 %354 }
 0x31b   : > { %655 = vrcp.f32 %v355_v49  ;;  %v367_v55 = vand.u32 2147483648, %v355_v49  ;;  %vm361_vm6 = vweird.f32 %v355_v49  ;;  %v365_v56 = vand.u32 2147483647, %v355_v49 }
 0x31d   : > { %v368_v58 = vor.u32 1.1754944e-38, %v367_v55  ;;  %vm366_vm8 = vcmp.eq.f32.partialorder %v365_v56, 8.507059e+37 }
 0x321   : > { %v656_v50 = vpop.eup %655 }
 0x322   : > { %v357_v51 = vmul.f32 %v656_v50, %v355_v49  ;;  %vm362_vm5 = vweird.f32 %v656_v50 }
 0x323   : > { %vm363_vm7 = vmor %vm361_vm6, %vm362_vm5 }
 0x324   : > { %v358_v52 = vsub.f32 1.0, %v357_v51 }
 0x326   : > { %v359_v53 = vmul.f32 %v656_v50, %v358_v52 }
 0x328   : > { %v360_v54 = vadd.f32 %v656_v50, %v359_v53 }
 0x32a   : > { %v364_v57 = vsel %vm363_vm7, %v656_v50, %v360_v54 }
 0x32b   : > { %v369_v59 = vsel %vm366_vm8, %v368_v58, %v364_v57 }
 0x396   : > { %v439_v60 = vpop.f32.mrf.mxu1 }
 0x397   : > { %v443_v62 = vmul.f32 %v439_v60, %v369_v59 }
 0x399   : > { %v446_v63 = vadd.f32 %v445_v61, %v443_v62 }
 0x39b   : > { %v447_v0 = vmul.f32 %v446_v63, %v860_v8 }
 0x39d   : > { %448 = vst [vmem:[%s257_s20] sm:$0xff] %v447_v0 }
 0x39e   : > { %v441_v1 = vpop.f32.mrf.mxu1 }
 0x39f   : > { %699 = shalt.err (!%p696_p8)
}
 0x3a0   : > { %606 = dma.vmem_to_hbm [thread:$0]  (%p817_p5), %s463_s21, 128, %s465_s22, %s450_s5  }
 0x3a1 PF: > { %p618_p9 = scmp.ge.s32.totalorder %s738_s26, 2  ;;  %s476_s14 = sand.u32 1, %s726_s23  }
 0x3a2   : > { %s477_s15 = scalar_lea.sflag [#allocation4], %s476_s14 }
 0x3a3   : > { %p613_p10 = pnand %p618_p9, %p821_p6 }
 0x3a5   : > { %p614_p11 = pneg %p613_p10 }
 0x3a7   : > { %721 = dma.done.wait (%p614_p11), %s477_s15, 128  }
 0x3a8   : > { %723 = vsyncadd (%p614_p11), %s477_s15, 4294967168  ;;  %p18_p12 = scmp.ge.s32.totalorder %s804_s28, 4   ;;  %s922_s23 = smov %s730_s24 }
 0x3a9   : > { %s923_s24 = smov %s734_s25  ;;  %s924_s25 = smov %s815_s7 }
 0x3aa   : > { %s925_s26 = smov %s804_s28  ;;  %20 = sbr.rel (!%p18_p12) target bundleno = 6 (0x6), region = 84 }
 0x3af   :  { %483 = vsyncpa [#allocation4], 1 }
 0x3b0   :  { %485 = vsyncpa [#allocation4 + $0x1], 1 }
 0x3b1   :  { %486 = vsyncpa [#allocation5], 1 }
 0x3b2   :  { %488 = vsyncpa [#allocation5 + $0x1], 1 }

</bundles_post_ra>
